<compile_context>
chip_gen: v7x
topology: tpu7x:2x2x1
jax: 0.10.0
libtpu: 0.0.40
codegen_flags: <defaults>
</compile_context>

<pallas_src>
import functools

import jax
import jax.numpy as jnp
from jax import lax
from jax.experimental import pallas as pl
from jax.experimental.pallas import tpu as pltpu

LANES = 128


def _round_up(v, m):
    return ((v + m - 1) // m) * m


def _transform(x, mode):
    """Per-element transform before the mean (computed in f32)."""
    x = x.astype(jnp.float32)
    if mode == "dis_real":      # fuse_math_min_mean_pos: min(x - 1, 0)
        return jnp.minimum(x - 1.0, 0.0)
    if mode == "dis_fake":      # fuse_math_min_mean_neg: min(-x - 1, 0)
        return jnp.minimum(-x - 1.0, 0.0)
    return x                    # generator update: plain mean


def _ganloss_kernel(x_ref, o_ref, *, mode, block_rows, chunk_rows, rows,
                    needs_mask):
    i = pl.program_id(0)
    nchunks = block_rows // chunk_rows

    def partial_sum(masked):
        def body(c, acc):
            start = pl.multiple_of(c * chunk_rows, chunk_rows)
            v = _transform(x_ref[pl.ds(start, chunk_rows), :], mode)
            if masked:
                # Zero rows past the valid [rows, 128] prefix (garbage VMEM of
                # the partial last block).  Single iota + compare + select.
                row = lax.broadcasted_iota(jnp.int32, (chunk_rows, LANES), 0)
                g_row = i * block_rows + c * chunk_rows + row
                v = jnp.where(g_row < rows, v, 0.0)
            # (chunk_rows, 128) -> (chunk_rows//8, 8, 128) -> (8, 128):
            # pure VPU vreg adds; no cross-lane work, small live range.
            return acc + v.reshape(chunk_rows // 8, 8, LANES).sum(axis=0)

        return lax.fori_loop(0, nchunks, body,
                             jnp.zeros((8, LANES), jnp.float32))

    if needs_mask:
        nb = pl.num_programs(0)

        @pl.when(i < nb - 1)
        def _():
            o_ref[...] = partial_sum(masked=False)

        @pl.when(i == nb - 1)
        def _():
            o_ref[...] = partial_sum(masked=True)
    else:
        o_ref[...] = partial_sum(masked=False)


def gan_loss(dis_output, t_real, dis_update=True, *,
             target_tile_bytes=8 * 1024 * 1024,
             xla_fastpath_elems=64 * 1024):
    """Pallas equivalent of GANLoss.forward (t_real / dis_update: Python bools)."""
    if dis_update:
        mode = "dis_real" if t_real else "dis_fake"
    else:
        mode = "gen"

    x = dis_output.reshape(-1)                   # keep native dtype
    n = x.shape[0]
    itemsize = jnp.dtype(x.dtype).itemsize

    # Tiny inputs: launch + per-grid-step overhead dominates; use fused XLA.
    if n < max(xla_fastpath_elems, LANES):
        return -jnp.mean(_transform(x, mode))

    # Lane-dense [rows, 128] prefix for the kernel; <128-element tail is added
    # in the epilogue.  No jnp.pad copy of the whole array.
    n_main = (n // LANES) * LANES
    rows = n_main // LANES
    x2 = lax.slice(x, (0,), (n_main,)).reshape(rows, LANES)

    # Tile sizing in BYTES.  Sublane packing: f32 -> 8, bf16 -> 16, int8 -> 32.
    sub = max(8, 32 // max(itemsize, 1))
    cr = sub * 32                                # in-kernel chunk (f32: 256 rows)
    rows_budget = max(cr, (target_tile_bytes // (LANES * itemsize)) // cr * cr)
    split_rows = max(cr, rows_budget // 4)       # min rows/tile when splitting
    if rows > rows_budget:
        br = rows_budget
    elif rows >= 2 * split_rows:
        # >=2 blocks so the "parallel" grid axis can use both TCs on v7x.
        br = _round_up(pl.cdiv(rows, 2), cr)
    else:
        br = _round_up(rows, cr)
    num_blocks = pl.cdiv(rows, br)
    needs_mask = (num_blocks * br) != rows

    kernel = functools.partial(
        _ganloss_kernel, mode=mode, block_rows=br, chunk_rows=cr,
        rows=rows, needs_mask=needs_mask)

    partials = pl.pallas_call(
        kernel,
        out_shape=jax.ShapeDtypeStruct((num_blocks * 8, LANES), jnp.float32),
        grid=(num_blocks,),
        in_specs=[pl.BlockSpec((br, LANES), lambda i: (i, 0))],
        out_specs=pl.BlockSpec((8, LANES), lambda i: (i, 0)),
        compiler_params=pltpu.CompilerParams(
            dimension_semantics=("parallel",),
            # Double-buffered 8 MiB input tile + tiny outputs; raise the scoped
            # limit so v5e's 16 MiB default does not force retiling.
            vmem_limit_bytes=32 * 1024 * 1024),
        cost_estimate=pl.CostEstimate(
            flops=3 * n,
            transcendentals=0,
            bytes_accessed=n * itemsize + num_blocks * 8 * LANES * 4),
    )(x2)

    total = jnp.sum(partials, dtype=jnp.float32)
    if n_main != n:
        tail = lax.slice(x, (n_main,), (n,))
        total = total + jnp.sum(_transform(tail, mode), dtype=jnp.float32)
    return -total / jnp.float32(n)


def _reference(x, t_real, dis_update=True):
    x = x.astype(jnp.float32)
    if dis_update:
        if t_real:
            return -jnp.mean(jnp.minimum(x - 1.0, 0.0))
        return -jnp.mean(jnp.minimum(-x - 1.0, 0.0))
    return -jnp.mean(x)


if __name__ == "__main__":
    key = jax.random.PRNGKey(0)
    k0, k1, k2, k3 = jax.random.split(key, 4)

    # (x, t_real, dis_update, kwargs)
    cases = []

    # Canonical small patch-discriminator output [2, 4, 16, 16].
    x_small = jax.random.normal(k0, (2, 4, 16, 16), dtype=jnp.float32)
    for t_real, dis_update in [(True, True), (False, True), (True, False)]:
        cases.append((x_small, t_real, dis_update, {}))                 # XLA fast path
        cases.append((x_small, t_real, dis_update,
                      dict(xla_fastpath_elems=0)))                      # force Pallas

    # Larger output: default single-block tile, and a forced 2-block split
    # (exercises the megacore-parallel multi-block path).
    x_big = jax.random.normal(k1, (4, 8, 64, 64), dtype=jnp.float32)
    cases.append((x_big, True, True, {}))
    cases.append((x_big, False, True, dict(target_tile_bytes=512 * 1024)))
    cases.append((x_big, True, False, dict(target_tile_bytes=512 * 1024)))

    # Multi-block grid whose LAST block is partial -> masked tail block.
    x_mb = jax.random.normal(k2, (5, 5, 48, 64), dtype=jnp.float32)
    cases.append((x_mb, True, True, dict(target_tile_bytes=256 * 1024)))
    cases.append((x_mb, False, True, dict(target_tile_bytes=256 * 1024)))

    # Ragged element count (not a multiple of 128) -> in-kernel row mask +
    # XLA tail in the epilogue (forced onto the Pallas path).
    x_ragged = jax.random.normal(k3, (2, 3, 11, 7), dtype=jnp.float32)
    cases.append((x_ragged, True, True, dict(xla_fastpath_elems=0)))
    cases.append((x_ragged, False, True, dict(xla_fastpath_elems=0)))
    cases.append((x_ragged, True, False, dict(xla_fastpath_elems=0)))

    # Native bf16: DMA'd as bf16, cast to f32 only inside the kernel.
    cases.append((x_small.astype(jnp.bfloat16), True, True,
                  dict(xla_fastpath_elems=0)))
    cases.append((x_big.astype(jnp.bfloat16), False, True, {}))

    ok = True
    for x, t_real, dis_update, kw in cases:
        got = jax.block_until_ready(gan_loss(x, t_real, dis_update, **kw))
        want = _reference(x, t_real, dis_update)
        if not jnp.allclose(got, want, rtol=1e-5, atol=1e-5):
            ok = False
            print(
                f"MISMATCH shape={x.shape} dtype={x.dtype} "
                f"t_real={t_real} dis_update={dis_update} kw={kw}: "
                f"{got} vs {want}"
            )

    if ok:
        print("KERNEL_OK")
</pallas_src>

<mosaic_0001>
module attributes {stable_mosaic.version = 11 : i64} {
  func.func @_ganloss_kernel(%arg0: i32, %arg1: memref<256x128xf32, #tpu.memory_space<vmem>>, %arg2: memref<8x128xf32, #tpu.memory_space<vmem>>) attributes {dimension_semantics = [#tpu.dimension_semantics<parallel>], iteration_bounds = array<i64: 1>, scalar_prefetch = 0 : i64, scratch_operands = 0 : i64, tpu.core_type = #tpu.core_type<tc>, window_params = [{transform_indices = @transform_0, window_bounds = array<i64: 256, 128>}, {transform_indices = @transform_1, window_bounds = array<i64: 8, 128>}]} {
    %c0_i32 = arith.constant 0 : i32
    %0 = arith.cmpi slt, %arg0, %c0_i32 : i32
    %1 = arith.extui %0 : i1 to i32
    %c0_i32_0 = arith.constant 0 : i32
    %2 = arith.cmpi ne, %1, %c0_i32_0 : i32
    scf.if %2 {
      %cst = arith.constant 0.000000e+00 : f32
      %6 = vector.broadcast %cst : f32 to vector<8x128xf32>
      %c0_i32_3 = arith.constant 0 : i32
      %c256_i32 = arith.constant 256 : i32
      %7 = arith.muli %c0_i32_3, %c256_i32 : i32
      %8 = tpu.assume_multiple %7, 256 : i32
      %9 = arith.index_cast %8 : i32 to index
      %c0 = arith.constant 0 : index
      %10 = vector.load %arg1[%9, %c0] : memref<256x128xf32, #tpu.memory_space<vmem>>, vector<256x128xf32>
      %cst_4 = arith.constant 1.000000e+00 : f32
      %11 = vector.broadcast %cst_4 : f32 to vector<256x128xf32>
      %12 = arith.subf %10, %11 : vector<256x128xf32>
      %cst_5 = arith.constant 0.000000e+00 : f32
      %13 = vector.broadcast %cst_5 : f32 to vector<256x128xf32>
      %14 = arith.minimumf %12, %13 : vector<256x128xf32>
      %15 = vector.shape_cast %14 : vector<256x128xf32> to vector<32x8x128xf32>
      %cst_6 = arith.constant dense<0.000000e+00> : vector<8x128xf32>
      %16 = vector.multi_reduction <add>, %15, %cst_6 [0] : vector<32x8x128xf32> to vector<8x128xf32>
      %17 = arith.addf %6, %16 : vector<8x128xf32>
      %c1_i32 = arith.constant 1 : i32
      %c0_7 = arith.constant 0 : index
      %c0_8 = arith.constant 0 : index
      %18 = vector.load %arg2[%c0_7, %c0_8] : memref<8x128xf32, #tpu.memory_space<vmem>>, vector<8x128xf32>
      tpu.vector_store %arg2[%c0_7, %c0_8], %17 {strides = array<i32>} : memref<8x128xf32, #tpu.memory_space<vmem>>, vector<8x128xf32>,
    } else {
    }
    %c0_i32_1 = arith.constant 0 : i32
    %3 = arith.cmpi eq, %arg0, %c0_i32_1 : i32
    %4 = arith.extui %3 : i1 to i32
    %c0_i32_2 = arith.constant 0 : i32
    %5 = arith.cmpi ne, %4, %c0_i32_2 : i32
    scf.if %5 {
      %cst = arith.constant 0.000000e+00 : f32
      %6 = vector.broadcast %cst : f32 to vector<8x128xf32>
      %c0_i32_3 = arith.constant 0 : i32
      %c256_i32 = arith.constant 256 : i32
      %7 = arith.muli %c0_i32_3, %c256_i32 : i32
      %8 = tpu.assume_multiple %7, 256 : i32
      %9 = arith.index_cast %8 : i32 to index
      %c0 = arith.constant 0 : index
      %10 = vector.load %arg1[%9, %c0] : memref<256x128xf32, #tpu.memory_space<vmem>>, vector<256x128xf32>
      %cst_4 = arith.constant 1.000000e+00 : f32
      %11 = vector.broadcast %cst_4 : f32 to vector<256x128xf32>
      %12 = arith.subf %10, %11 : vector<256x128xf32>
      %cst_5 = arith.constant 0.000000e+00 : f32
      %13 = vector.broadcast %cst_5 : f32 to vector<256x128xf32>
      %14 = arith.minimumf %12, %13 : vector<256x128xf32>
      %15 = tpu.iota {dimensions = array<i32: 0>} : vector<256x128xi32>
      %c256_i32_6 = arith.constant 256 : i32
      %16 = arith.muli %arg0, %c256_i32_6 : i32
      %c256_i32_7 = arith.constant 256 : i32
      %17 = arith.muli %c0_i32_3, %c256_i32_7 : i32
      %18 = arith.addi %16, %17 : i32
      %19 = vector.broadcast %18 : i32 to vector<256x128xi32>
      %20 = arith.addi %19, %15 : vector<256x128xi32>
      %c16_i32 = arith.constant 16 : i32
      %21 = vector.broadcast %c16_i32 : i32 to vector<256x128xi32>
      %22 = arith.cmpi slt, %20, %21 : vector<256x128xi32>
      %cst_8 = arith.constant 0.000000e+00 : f32
      %23 = vector.broadcast %cst_8 : f32 to vector<256x128xf32>
      %24 = arith.select %22, %14, %23 : vector<256x128xi1>, vector<256x128xf32>
      %25 = vector.shape_cast %24 : vector<256x128xf32> to vector<32x8x128xf32>
      %cst_9 = arith.constant dense<0.000000e+00> : vector<8x128xf32>
      %26 = vector.multi_reduction <add>, %25, %cst_9 [0] : vector<32x8x128xf32> to vector<8x128xf32>
      %27 = arith.addf %6, %26 : vector<8x128xf32>
      %c1_i32 = arith.constant 1 : i32
      %c0_10 = arith.constant 0 : index
      %c0_11 = arith.constant 0 : index
      %28 = vector.load %arg2[%c0_10, %c0_11] : memref<8x128xf32, #tpu.memory_space<vmem>>, vector<8x128xf32>
      tpu.vector_store %arg2[%c0_10, %c0_11], %27 {strides = array<i32>} : memref<8x128xf32, #tpu.memory_space<vmem>>, vector<8x128xf32>,
    } else {
    }
    return
  }
  func.func @transform_0(%arg0: i32) -> (i32, i32) {
    %c0_i32 = arith.constant 0 : i32
    %c0_i32_0 = arith.constant 0 : i32
    return %arg0, %c0_i32 : i32, i32
  }
  func.func @transform_1(%arg0: i32) -> (i32, i32) {
    %c0_i32 = arith.constant 0 : i32
    %c0_i32_0 = arith.constant 0 : i32
    return %arg0, %c0_i32 : i32, i32
  }
}

</mosaic_0001>

<bundles_post_ra>
// kernel: tpu_custom_call.1
= control target key start
LH: loop header
LB: loop body
LE: loop exit
PB: predicated region body
PF: predicated region fallthrough
CT: control target
= control target key end

     0   :  { %6 = vsyncpa [#allocation3], 0  ;;  %s589_s0 = inlined_call_operand.hbm [shape: f32[16,128], index: 0, kind: input, shape index: {}]   ;;  %s590_s1 = inlined_call_operand.hbm [shape: f32[8,128], index: 1, kind: output, shape index: {}]  }
   0x1   :  { %7 = vsyncpa [#allocation4], 0 }
   0x2   :  { %12 = vsyncadd [#allocation3], 3840  ;;  %s551_s6 = smov [#allocation2]   ;;  %s503_s10 = scalar_lea.hbm %s589_s0, 256 }
   0x3   :  { %s13_s7 = sshll.u32 %s551_s6, 4  ;;  %p504_p0 = scmp.ne.s32.totalorder %s589_s0, %s503_s10  ;;  %s14_s7 = int_to_ptr.vmem [resolvable:$true] %s13_s7 }
   0x4   :  { %p507_p1 = scmp.lt.u32.totalorder %s503_s10, %s589_s0 }
   0x6   :  { %p509_p2 = pnand %p507_p1, %p504_p0 }
   0x8   :  { %512 = shalt.err (!%p509_p2)
}
   0x9   :  { %s513_s15 = scalar_lea.vmem %s14_s7, 256  ;;  %s517_s16 = scalar_lea.vmem %s14_s7, 4096 }
   0xa   :  { %p514_p3 = scmp.ne.s32.totalorder %s14_s7, %s513_s15  ;;  %p518_p4 = scmp.lt.s32.totalorder %s14_s7, %s14_s7 }
   0xb   :  { %p519_p5 = scmp.lt.s32.totalorder %s517_s16, %s513_s15 }
   0xd   :  { %p520_p6 = por %p519_p5, %p518_p4 }
   0xf   :  { %p521_p7 = pnand %p520_p6, %p514_p3 }
  0x11   :  { %524 = shalt.err (!%p521_p7)
}
  0x12   :  { %s552_s17 = smov 128   ;;  %s553_s18 = smov 8  }
  0x13   :  { %19 = dma.hbm_to_vmem [thread:$0]  %s589_s0, 256, %s14_s7, [#allocation3], %s552_s17, %s552_s17, %s553_s18  }
  0x14   :  { %547 = dma.done.wait [#allocation3], 4096  }
  0x15   :  { %548 = vsyncadd [#allocation3], 4294963200  ;;  %v160_v0 = vld [vmem:[#allocation2] sm:$0xff]  ;;  %v161_v1 = vld [vmem:[#allocation2 + $0x8] sm:$0xff]  ;;  %s554_s21 = smov [#allocation5]  }
  0x16   :  { %v467_v2 = vadd.f32 -1.0, %v160_v0  ;;  %v468_v3 = vadd.f32 -1.0, %v161_v1  ;;  %s426_s22 = sshll.u32 %s554_s21, 4  ;;  %s427_s22 = int_to_ptr.vmem [resolvable:$true] %s426_s22 }
  0x17   :  { %s525_s23 = scalar_lea.vmem %s427_s22, 128  ;;  %p530_p9 = scmp.lt.s32.totalorder %s427_s22, %s427_s22 }
  0x18   :  { %v224_v4 = vmin.f32 %v467_v2, 0.0  ;;  %v225_v5 = vmin.f32 %v468_v3, 0.0  ;;  %p526_p8 = scmp.ne.s32.totalorder %s427_s22, %s525_s23  ;;  %p531_p10 = scmp.lt.s32.totalorder %s525_s23, %s525_s23 }
  0x1a   :  { %v387_v6 = vadd.f32 %v225_v5, %v224_v4  ;;  %p532_p11 = por %p531_p10, %p530_p9 }
  0x1c   :  { %419 = vst [vmem:[#allocation5] sm:$0xff] %v387_v6  ;;  %p533_p12 = pnand %p532_p11, %p526_p8 }
  0x1e   :  { %536 = shalt.err (!%p533_p12)
}
  0x1f   :  { %s537_s25 = scalar_lea.hbm %s590_s1, 128 }
  0x20   :  { %p538_p13 = scmp.ne.s32.totalorder %s590_s1, %s537_s25  ;;  %p541_p0 = scmp.lt.u32.totalorder %s537_s25, %s590_s1 }
  0x22   :  { %p543_p1 = pnand %p541_p0, %p538_p13 }
  0x24   :  { %546 = shalt.err (!%p543_p1)
}
  0x25   :  { %429 = dma.vmem_to_hbm [thread:$0]  %s427_s22, 128, %s590_s1, [#allocation4]  }
  0x26   :  { %549 = dma.done.wait [#allocation4], 128  }
  0x27   :  { %550 = vsyncadd [#allocation4], 4294967168 }
  0x28   :  { %433 = vsyncpa [#allocation3], 1 }
  0x29   :  { %434 = vsyncpa [#allocation4], 1 }

</bundles_post_ra>
